<compile_context>
chip_gen: v7x
topology: tpu7x:2x2x1
jax: 0.10.0
libtpu: 0.0.40
codegen_flags: <defaults>
</compile_context>

<pallas_src>
import functools

import jax
import jax.numpy as jnp
from jax.experimental import pallas as pl
from jax.experimental.pallas import tpu as pltpu

_LANES = 128
_SUBLANE_MULT = 32  # covers f32 (8,128), bf16 (16,128), int8 (32,128) packing


def _ceil_div(a, b):
    return -(-a // b)


def _round_down_mult(x, m):
    return (x // m) * m


def _vmem_limit_bytes():
    """Pick a safe scoped-VMEM limit from the chip's physical VMEM."""
    cap = None
    try:
        info = pltpu.get_tpu_info()
        for name in ("vmem_capacity_bytes", "vmem_size_bytes", "vmem_bytes"):
            cap = getattr(info, name, None)
            if cap:
                break
    except Exception:
        cap = None
    if not cap:
        cap = 64 * 1024 * 1024  # conservative fallback (safe on v7x too)
    # 48 MiB on v7x (64 MiB physical), 64 MiB on v5e/v6e (128 MiB physical).
    return int(min(64 * 1024 * 1024, (int(cap) * 3) // 4))


def _pick_rows(tile_rows, R, B, C, c_out, label_bytes, logit_bytes,
               softmax_bytes, vmem_limit):
    """Largest spatial tile (rows of 128 lanes) that fits the VMEM budget."""
    # Double-buffered pipeline blocks + ~4 f32 slabs of compiler-managed
    # intermediates (class max, denom/inv, working exp slab).
    per_row_io = _LANES * (label_bytes + C * logit_bytes
                           + c_out * 4 + c_out * softmax_bytes)
    per_row = 2 * per_row_io + 4 * _LANES * 4
    budget = int(vmem_limit * 0.8)
    max_rows = max(_SUBLANE_MULT, budget // per_row)

    rows = min(int(tile_rows), max_rows, R)
    if rows < R:
        rows = max(_SUBLANE_MULT, _round_down_mult(rows, _SUBLANE_MULT))
    # v7x megacore balance: keep at least ~4 grid steps when the volume is big
    # enough that splitting costs little (no-op on v5e/v6e single-core chips).
    while B * _ceil_div(R, rows) < 4 and rows > 2 * _SUBLANE_MULT:
        rows = max(_SUBLANE_MULT, _round_down_mult(rows // 2, _SUBLANE_MULT))
    return rows


def _preprocess_kernel(labels_ref, logits_ref, onehot_ref, softmax_ref, *, c_start):
    """One grid step: one batch element, one (rows, 128) spatial tile.

    labels_ref : (1, rows, 128) integer dtype (native, possibly int8/uint8)
    logits_ref : (1, C, rows, 128) float
    onehot_ref : (1, C_out, rows, 128) float32
    softmax_ref: (1, C_out, rows, 128) logits dtype
    with C_out = C - c_start (c_start == 1 when background is excluded).
    """
    num_classes = logits_ref.shape[1]
    c_out = onehot_ref.shape[1]

    labels = labels_ref[0]                                   # (rows, 128) int

    # Pass 1: class max (stable softmax). One class slab live at a time.
    m = logits_ref[0, 0].astype(jnp.float32)
    for c in range(1, num_classes):
        m = jnp.maximum(m, logits_ref[0, c].astype(jnp.float32))

    # Pass 2: softmax denominator. exp recomputed from logits_ref reads so we
    # never hold C full-tile f32 intermediates (EUP exp slot is otherwise idle).
    denom = jnp.exp(logits_ref[0, 0].astype(jnp.float32) - m)
    for c in range(1, num_classes):
        denom = denom + jnp.exp(logits_ref[0, c].astype(jnp.float32) - m)

    inv = pl.reciprocal(denom, approx=False)                 # 1 recip, C muls

    # Pass 3: stores. exp(x - m) recomputed with the same f32 subtraction, so
    # results are bit-identical to the denominator pass (stable softmax).
    for c in range(c_out):
        cls = c + c_start
        x = logits_ref[0, cls].astype(jnp.float32)
        softmax_ref[0, c] = (jnp.exp(x - m) * inv).astype(softmax_ref.dtype)
        # NOTE: out-of-range / ignore-index labels silently produce an all-zero
        # one-hot row (torch.nn.functional.one_hot would raise instead).
        onehot_ref[0, c] = (labels == cls).astype(onehot_ref.dtype)


@functools.partial(jax.jit, static_argnames=("exclude_background", "tile_rows"))
def segmentation_loss_preprocess(y_true, y_pred, exclude_background=False,
                                 tile_rows=512):
    """JAX/Pallas equivalent of SegmentationLoss.preprocess.

    Args:
      y_true: (B, H, W, D) integer labels (any integer dtype; kept narrow).
      y_pred: (B, C, H, W, D) raw logits.
      exclude_background: drop class 0 from both outputs (fused in-kernel).
      tile_rows: cap on spatial rows (of 128 lanes) per grid step; the actual
        tile is sized against the chip's VMEM budget.

    Returns:
      (y_true_onehot, y_pred_softmax): one-hot is float32 (as in the PyTorch
      reference), softmax keeps y_pred's dtype. Shapes (B, C', H, W, D) with
      C' = C - 1 if exclude_background else C.
    """
    B, C, H, W, D = y_pred.shape
    if y_true.shape != (B, H, W, D):
        raise ValueError(
            f"y_true shape {y_true.shape} incompatible with y_pred {y_pred.shape}")
    if exclude_background and C < 2:
        raise ValueError("exclude_background requires at least 2 classes")

    S = H * W * D
    S128 = _ceil_div(S, _LANES) * _LANES
    lane_pad = S128 - S
    R = S128 // _LANES

    labels = y_true.reshape(B, S)
    if not jnp.issubdtype(labels.dtype, jnp.integer):
        labels = labels.astype(jnp.int32)
    logits = y_pred.reshape(B, C, S)
    if lane_pad:
        # Only the <=127-element lane tail is padded; voxel counts that are a
        # multiple of 128 (typical 3D patch sizes) skip this branch entirely,
        # so no extra HBM copies are made on the common path.
        labels = jnp.pad(labels, ((0, 0), (0, lane_pad)))
        logits = jnp.pad(logits, ((0, 0), (0, 0), (0, lane_pad)))
    labels = labels.reshape(B, R, _LANES)
    logits = logits.reshape(B, C, R, _LANES)

    c_start = 1 if exclude_background else 0
    c_out = C - c_start
    onehot_dtype = jnp.float32         # PyTorch: y_true.to(torch.float32)
    softmax_dtype = y_pred.dtype       # PyTorch: F.softmax keeps input dtype

    vmem_limit = _vmem_limit_bytes()
    rows = _pick_rows(
        tile_rows, R, B, C, c_out,
        label_bytes=jnp.dtype(labels.dtype).itemsize,
        logit_bytes=jnp.dtype(logits.dtype).itemsize,
        softmax_bytes=jnp.dtype(softmax_dtype).itemsize,
        vmem_limit=vmem_limit)
    num_tiles = _ceil_div(R, rows)      # ragged last block handled by Pallas

    grid = (B, num_tiles)
    kernel = functools.partial(_preprocess_kernel, c_start=c_start)

    onehot, softmax = pl.pallas_call(
        kernel,
        out_shape=(
            jax.ShapeDtypeStruct((B, c_out, R, _LANES), onehot_dtype),
            jax.ShapeDtypeStruct((B, c_out, R, _LANES), softmax_dtype),
        ),
        grid_spec=pltpu.PrefetchScalarGridSpec(
            num_scalar_prefetch=0,
            grid=grid,
            in_specs=[
                pl.BlockSpec((1, rows, _LANES), lambda b, t: (b, t, 0)),
                pl.BlockSpec((1, C, rows, _LANES), lambda b, t: (b, 0, t, 0)),
            ],
            out_specs=[
                pl.BlockSpec((1, c_out, rows, _LANES), lambda b, t: (b, 0, t, 0)),
                pl.BlockSpec((1, c_out, rows, _LANES), lambda b, t: (b, 0, t, 0)),
            ],
        ),
        compiler_params=pltpu.CompilerParams(
            dimension_semantics=("parallel", "parallel"),
            vmem_limit_bytes=vmem_limit,
        ),
    )(labels, logits)

    onehot = onehot.reshape(B, c_out, S128)
    softmax = softmax.reshape(B, c_out, S128)
    if lane_pad:
        onehot = onehot[:, :, :S]
        softmax = softmax[:, :, :S]
    onehot = onehot.reshape(B, c_out, H, W, D)
    softmax = softmax.reshape(B, c_out, H, W, D)
    return onehot, softmax


class SegmentationLoss:
    """JAX counterpart of the PyTorch SegmentationLoss base class."""

    def __init__(self, exclude_background: bool = False):
        self.exclude_background = exclude_background
        self.spatial_dims = (2, 3, 4)

    def preprocess(self, y_true, y_pred):
        return segmentation_loss_preprocess(
            y_true, y_pred, exclude_background=self.exclude_background)

    def forward(self, y_true, y_pred, *args, **kwargs):
        # TODO(synk): `forward` is abstract in the reference module; subclasses
        # define the concrete loss. The biggest remaining win is fusing that
        # loss into this kernel so the f32 one-hot / softmax tensors (~60% of
        # current HBM traffic) are never materialized.
        raise NotImplementedError


if __name__ == "__main__":
    key = jax.random.PRNGKey(0)
    k1, k2 = jax.random.split(key)

    # 1. Base path: f32 logits, int32 labels, S a multiple of 128 (zero-copy).
    B, C, H, W, D = 2, 4, 8, 8, 8
    y_true = jax.random.randint(k1, (B, H, W, D), 0, C, dtype=jnp.int32)
    y_pred = jax.random.normal(k2, (B, C, H, W, D), dtype=jnp.float32)

    loss_base = SegmentationLoss(exclude_background=False)
    onehot, softmax = loss_base.preprocess(y_true, y_pred)
    jax.block_until_ready((onehot, softmax))

    ref_onehot = jax.nn.one_hot(y_true, C, axis=1, dtype=jnp.float32)
    ref_softmax = jax.nn.softmax(y_pred, axis=1)
    assert onehot.shape == (B, C, H, W, D)
    assert softmax.shape == (B, C, H, W, D)
    assert jnp.allclose(onehot, ref_onehot)
    assert jnp.allclose(softmax, ref_softmax, atol=1e-6)

    # 2. exclude_background path (fused channel drop inside the kernel).
    loss_nobg = SegmentationLoss(exclude_background=True)
    onehot_nb, softmax_nb = loss_nobg.preprocess(y_true, y_pred)
    jax.block_until_ready((onehot_nb, softmax_nb))
    assert onehot_nb.shape == (B, C - 1, H, W, D)
    assert jnp.allclose(onehot_nb, ref_onehot[:, 1:])
    assert jnp.allclose(softmax_nb, ref_softmax[:, 1:], atol=1e-6)

    # 3. Odd spatial extent (S not a multiple of 128): lane-tail pad path.
    H2, W2, D2 = 5, 7, 3
    y_true2 = jax.random.randint(k1, (B, H2, W2, D2), 0, C, dtype=jnp.int32)
    y_pred2 = jax.random.normal(k2, (B, C, H2, W2, D2), dtype=jnp.float32)
    oh2, sm2 = loss_base.preprocess(y_true2, y_pred2)
    jax.block_until_ready((oh2, sm2))
    assert jnp.allclose(oh2, jax.nn.one_hot(y_true2, C, axis=1, dtype=jnp.float32))
    assert jnp.allclose(sm2, jax.nn.softmax(y_pred2, axis=1), atol=1e-6)

    # 4. Ragged last tile (rows does not divide R): no wrapper pad, Pallas
    #    masks the out-of-bounds tail of the final block.
    H3, W3, D3 = 8, 8, 80                               # S = 5120, R = 40
    y_true3 = jax.random.randint(k1, (B, H3, W3, D3), 0, C, dtype=jnp.int32)
    y_pred3 = jax.random.normal(k2, (B, C, H3, W3, D3), dtype=jnp.float32)
    oh3, sm3 = segmentation_loss_preprocess(y_true3, y_pred3, tile_rows=32)
    jax.block_until_ready((oh3, sm3))
    assert jnp.allclose(oh3, jax.nn.one_hot(y_true3, C, axis=1, dtype=jnp.float32))
    assert jnp.allclose(sm3, jax.nn.softmax(y_pred3, axis=1), atol=1e-6)

    # 5. Narrow label dtype (int8) + bf16 logits: labels streamed without an
    #    int32 cast, softmax written back in bf16 (half the output traffic).
    B4, C4, H4, W4, D4 = 1, 3, 8, 8, 64                 # S = 4096, R = 32
    y_true4 = jax.random.randint(k1, (B4, H4, W4, D4), 0, C4,
                                 dtype=jnp.int32).astype(jnp.int8)
    y_pred4 = jax.random.normal(k2, (B4, C4, H4, W4, D4),
                                dtype=jnp.float32).astype(jnp.bfloat16)
    oh4, sm4 = loss_base.preprocess(y_true4, y_pred4)
    jax.block_until_ready((oh4, sm4))
    assert sm4.dtype == jnp.bfloat16
    ref_oh4 = jax.nn.one_hot(y_true4.astype(jnp.int32), C4, axis=1, dtype=jnp.float32)
    ref_sm4 = jax.nn.softmax(y_pred4.astype(jnp.float32), axis=1).astype(jnp.bfloat16)
    assert jnp.allclose(oh4, ref_oh4)
    assert jnp.allclose(sm4.astype(jnp.float32), ref_sm4.astype(jnp.float32),
                        atol=1e-2)

    print("KERNEL_OK")
</pallas_src>

<mosaic_0001>
module attributes {stable_mosaic.version = 11 : i64} {
  func.func @_preprocess_kernel(%arg0: i32, %arg1: i32, %arg2: memref<1x4x128xi32, #tpu.memory_space<vmem>>, %arg3: memref<1x4x4x128xf32, #tpu.memory_space<vmem>>, %arg4: memref<1x4x4x128xf32, #tpu.memory_space<vmem>>, %arg5: memref<1x4x4x128xf32, #tpu.memory_space<vmem>>) attributes {dimension_semantics = [#tpu.dimension_semantics<parallel>, #tpu.dimension_semantics<parallel>], iteration_bounds = array<i64: 2, 1>, scalar_prefetch = 0 : i64, scratch_operands = 0 : i64, tpu.core_type = #tpu.core_type<tc>, window_params = [{transform_indices = @transform_0, window_bounds = array<i64: 1, 4, 128>}, {transform_indices = @transform_1, window_bounds = array<i64: 1, 4, 4, 128>}, {transform_indices = @transform_2, window_bounds = array<i64: 1, 4, 4, 128>}, {transform_indices = @transform_3, window_bounds = array<i64: 1, 4, 4, 128>}]} {
    %c0 = arith.constant 0 : index
    %c0_0 = arith.constant 0 : index
    %c0_1 = arith.constant 0 : index
    %0 = vector.load %arg2[%c0, %c0_0, %c0_1] : memref<1x4x128xi32, #tpu.memory_space<vmem>>, vector<1x4x128xi32>
    %1 = vector.shape_cast %0 : vector<1x4x128xi32> to vector<4x128xi32>
    %c0_2 = arith.constant 0 : index
    %c0_3 = arith.constant 0 : index
    %c0_4 = arith.constant 0 : index
    %c0_5 = arith.constant 0 : index
    %2 = vector.load %arg3[%c0_2, %c0_3, %c0_4, %c0_5] : memref<1x4x4x128xf32, #tpu.memory_space<vmem>>, vector<1x1x4x128xf32>
    %3 = vector.shape_cast %2 : vector<1x1x4x128xf32> to vector<4x128xf32>
    %c0_6 = arith.constant 0 : index
    %c1 = arith.constant 1 : index
    %c0_7 = arith.constant 0 : index
    %c0_8 = arith.constant 0 : index
    %4 = vector.load %arg3[%c0_6, %c1, %c0_7, %c0_8] : memref<1x4x4x128xf32, #tpu.memory_space<vmem>>, vector<1x1x4x128xf32>
    %5 = vector.shape_cast %4 : vector<1x1x4x128xf32> to vector<4x128xf32>
    %6 = arith.maximumf %3, %5 : vector<4x128xf32>
    %c0_9 = arith.constant 0 : index
    %c2 = arith.constant 2 : index
    %c0_10 = arith.constant 0 : index
    %c0_11 = arith.constant 0 : index
    %7 = vector.load %arg3[%c0_9, %c2, %c0_10, %c0_11] : memref<1x4x4x128xf32, #tpu.memory_space<vmem>>, vector<1x1x4x128xf32>
    %8 = vector.shape_cast %7 : vector<1x1x4x128xf32> to vector<4x128xf32>
    %9 = arith.maximumf %6, %8 : vector<4x128xf32>
    %c0_12 = arith.constant 0 : index
    %c3 = arith.constant 3 : index
    %c0_13 = arith.constant 0 : index
    %c0_14 = arith.constant 0 : index
    %10 = vector.load %arg3[%c0_12, %c3, %c0_13, %c0_14] : memref<1x4x4x128xf32, #tpu.memory_space<vmem>>, vector<1x1x4x128xf32>
    %11 = vector.shape_cast %10 : vector<1x1x4x128xf32> to vector<4x128xf32>
    %12 = arith.maximumf %9, %11 : vector<4x128xf32>
    %c0_15 = arith.constant 0 : index
    %c0_16 = arith.constant 0 : index
    %c0_17 = arith.constant 0 : index
    %c0_18 = arith.constant 0 : index
    %13 = vector.load %arg3[%c0_15, %c0_16, %c0_17, %c0_18] : memref<1x4x4x128xf32, #tpu.memory_space<vmem>>, vector<1x1x4x128xf32>
    %14 = vector.shape_cast %13 : vector<1x1x4x128xf32> to vector<4x128xf32>
    %15 = arith.subf %14, %12 : vector<4x128xf32>
    %16 = math.exp %15 : vector<4x128xf32>
    %c0_19 = arith.constant 0 : index
    %c1_20 = arith.constant 1 : index
    %c0_21 = arith.constant 0 : index
    %c0_22 = arith.constant 0 : index
    %17 = vector.load %arg3[%c0_19, %c1_20, %c0_21, %c0_22] : memref<1x4x4x128xf32, #tpu.memory_space<vmem>>, vector<1x1x4x128xf32>
    %18 = vector.shape_cast %17 : vector<1x1x4x128xf32> to vector<4x128xf32>
    %19 = arith.subf %18, %12 : vector<4x128xf32>
    %20 = math.exp %19 : vector<4x128xf32>
    %21 = arith.addf %16, %20 : vector<4x128xf32>
    %c0_23 = arith.constant 0 : index
    %c2_24 = arith.constant 2 : index
    %c0_25 = arith.constant 0 : index
    %c0_26 = arith.constant 0 : index
    %22 = vector.load %arg3[%c0_23, %c2_24, %c0_25, %c0_26] : memref<1x4x4x128xf32, #tpu.memory_space<vmem>>, vector<1x1x4x128xf32>
    %23 = vector.shape_cast %22 : vector<1x1x4x128xf32> to vector<4x128xf32>
    %24 = arith.subf %23, %12 : vector<4x128xf32>
    %25 = math.exp %24 : vector<4x128xf32>
    %26 = arith.addf %21, %25 : vector<4x128xf32>
    %c0_27 = arith.constant 0 : index
    %c3_28 = arith.constant 3 : index
    %c0_29 = arith.constant 0 : index
    %c0_30 = arith.constant 0 : index
    %27 = vector.load %arg3[%c0_27, %c3_28, %c0_29, %c0_30] : memref<1x4x4x128xf32, #tpu.memory_space<vmem>>, vector<1x1x4x128xf32>
    %28 = vector.shape_cast %27 : vector<1x1x4x128xf32> to vector<4x128xf32>
    %29 = arith.subf %28, %12 : vector<4x128xf32>
    %30 = math.exp %29 : vector<4x128xf32>
    %31 = arith.addf %26, %30 : vector<4x128xf32>
    %32 = tpu.reciprocal %31 : vector<4x128xf32> -> vector<4x128xf32>
    %c0_31 = arith.constant 0 : index
    %c0_32 = arith.constant 0 : index
    %c0_33 = arith.constant 0 : index
    %c0_34 = arith.constant 0 : index
    %33 = vector.load %arg3[%c0_31, %c0_32, %c0_33, %c0_34] : memref<1x4x4x128xf32, #tpu.memory_space<vmem>>, vector<1x1x4x128xf32>
    %34 = vector.shape_cast %33 : vector<1x1x4x128xf32> to vector<4x128xf32>
    %35 = arith.subf %34, %12 : vector<4x128xf32>
    %36 = math.exp %35 : vector<4x128xf32>
    %37 = arith.mulf %36, %32 : vector<4x128xf32>
    %c0_35 = arith.constant 0 : index
    %c0_36 = arith.constant 0 : index
    %c0_37 = arith.constant 0 : index
    %c0_38 = arith.constant 0 : index
    %38 = vector.load %arg5[%c0_35, %c0_36, %c0_37, %c0_38] : memref<1x4x4x128xf32, #tpu.memory_space<vmem>>, vector<1x1x4x128xf32>
    %39 = vector.shape_cast %38 : vector<1x1x4x128xf32> to vector<4x128xf32>
    %40 = vector.shape_cast %37 : vector<4x128xf32> to vector<1x1x4x128xf32>
    tpu.vector_store %arg5[%c0_35, %c0_36, %c0_37, %c0_38], %40 {strides = array<i32>} : memref<1x4x4x128xf32, #tpu.memory_space<vmem>>, vector<1x1x4x128xf32>,
    %c0_i32 = arith.constant 0 : i32
    %41 = vector.broadcast %c0_i32 : i32 to vector<4x128xi32>
    %42 = arith.cmpi eq, %1, %41 : vector<4x128xi32>
    %43 = arith.extui %42 : vector<4x128xi1> to vector<4x128xi32>
    %44 = arith.sitofp %43 : vector<4x128xi32> to vector<4x128xf32>
    %c0_39 = arith.constant 0 : index
    %c0_40 = arith.constant 0 : index
    %c0_41 = arith.constant 0 : index
    %c0_42 = arith.constant 0 : index
    %45 = vector.load %arg4[%c0_39, %c0_40, %c0_41, %c0_42] : memref<1x4x4x128xf32, #tpu.memory_space<vmem>>, vector<1x1x4x128xf32>
    %46 = vector.shape_cast %45 : vector<1x1x4x128xf32> to vector<4x128xf32>
    %47 = vector.shape_cast %44 : vector<4x128xf32> to vector<1x1x4x128xf32>
    tpu.vector_store %arg4[%c0_39, %c0_40, %c0_41, %c0_42], %47 {strides = array<i32>} : memref<1x4x4x128xf32, #tpu.memory_space<vmem>>, vector<1x1x4x128xf32>,
    %c0_43 = arith.constant 0 : index
    %c1_44 = arith.constant 1 : index
    %c0_45 = arith.constant 0 : index
    %c0_46 = arith.constant 0 : index
    %48 = vector.load %arg3[%c0_43, %c1_44, %c0_45, %c0_46] : memref<1x4x4x128xf32, #tpu.memory_space<vmem>>, vector<1x1x4x128xf32>
    %49 = vector.shape_cast %48 : vector<1x1x4x128xf32> to vector<4x128xf32>
    %50 = arith.subf %49, %12 : vector<4x128xf32>
    %51 = math.exp %50 : vector<4x128xf32>
    %52 = arith.mulf %51, %32 : vector<4x128xf32>
    %c0_47 = arith.constant 0 : index
    %c1_48 = arith.constant 1 : index
    %c0_49 = arith.constant 0 : index
    %c0_50 = arith.constant 0 : index
    %53 = vector.load %arg5[%c0_47, %c1_48, %c0_49, %c0_50] : memref<1x4x4x128xf32, #tpu.memory_space<vmem>>, vector<1x1x4x128xf32>
    %54 = vector.shape_cast %53 : vector<1x1x4x128xf32> to vector<4x128xf32>
    %55 = vector.shape_cast %52 : vector<4x128xf32> to vector<1x1x4x128xf32>
    tpu.vector_store %arg5[%c0_47, %c1_48, %c0_49, %c0_50], %55 {strides = array<i32>} : memref<1x4x4x128xf32, #tpu.memory_space<vmem>>, vector<1x1x4x128xf32>,
    %c1_i32 = arith.constant 1 : i32
    %56 = vector.broadcast %c1_i32 : i32 to vector<4x128xi32>
    %57 = arith.cmpi eq, %1, %56 : vector<4x128xi32>
    %58 = arith.extui %57 : vector<4x128xi1> to vector<4x128xi32>
    %59 = arith.sitofp %58 : vector<4x128xi32> to vector<4x128xf32>
    %c0_51 = arith.constant 0 : index
    %c1_52 = arith.constant 1 : index
    %c0_53 = arith.constant 0 : index
    %c0_54 = arith.constant 0 : index
    %60 = vector.load %arg4[%c0_51, %c1_52, %c0_53, %c0_54] : memref<1x4x4x128xf32, #tpu.memory_space<vmem>>, vector<1x1x4x128xf32>
    %61 = vector.shape_cast %60 : vector<1x1x4x128xf32> to vector<4x128xf32>
    %62 = vector.shape_cast %59 : vector<4x128xf32> to vector<1x1x4x128xf32>
    tpu.vector_store %arg4[%c0_51, %c1_52, %c0_53, %c0_54], %62 {strides = array<i32>} : memref<1x4x4x128xf32, #tpu.memory_space<vmem>>, vector<1x1x4x128xf32>,
    %c0_55 = arith.constant 0 : index
    %c2_56 = arith.constant 2 : index
    %c0_57 = arith.constant 0 : index
    %c0_58 = arith.constant 0 : index
    %63 = vector.load %arg3[%c0_55, %c2_56, %c0_57, %c0_58] : memref<1x4x4x128xf32, #tpu.memory_space<vmem>>, vector<1x1x4x128xf32>
    %64 = vector.shape_cast %63 : vector<1x1x4x128xf32> to vector<4x128xf32>
    %65 = arith.subf %64, %12 : vector<4x128xf32>
    %66 = math.exp %65 : vector<4x128xf32>
    %67 = arith.mulf %66, %32 : vector<4x128xf32>
    %c0_59 = arith.constant 0 : index
    %c2_60 = arith.constant 2 : index
    %c0_61 = arith.constant 0 : index
    %c0_62 = arith.constant 0 : index
    %68 = vector.load %arg5[%c0_59, %c2_60, %c0_61, %c0_62] : memref<1x4x4x128xf32, #tpu.memory_space<vmem>>, vector<1x1x4x128xf32>
    %69 = vector.shape_cast %68 : vector<1x1x4x128xf32> to vector<4x128xf32>
    %70 = vector.shape_cast %67 : vector<4x128xf32> to vector<1x1x4x128xf32>
    tpu.vector_store %arg5[%c0_59, %c2_60, %c0_61, %c0_62], %70 {strides = array<i32>} : memref<1x4x4x128xf32, #tpu.memory_space<vmem>>, vector<1x1x4x128xf32>,
    %c2_i32 = arith.constant 2 : i32
    %71 = vector.broadcast %c2_i32 : i32 to vector<4x128xi32>
    %72 = arith.cmpi eq, %1, %71 : vector<4x128xi32>
    %73 = arith.extui %72 : vector<4x128xi1> to vector<4x128xi32>
    %74 = arith.sitofp %73 : vector<4x128xi32> to vector<4x128xf32>
    %c0_63 = arith.constant 0 : index
    %c2_64 = arith.constant 2 : index
    %c0_65 = arith.constant 0 : index
    %c0_66 = arith.constant 0 : index
    %75 = vector.load %arg4[%c0_63, %c2_64, %c0_65, %c0_66] : memref<1x4x4x128xf32, #tpu.memory_space<vmem>>, vector<1x1x4x128xf32>
    %76 = vector.shape_cast %75 : vector<1x1x4x128xf32> to vector<4x128xf32>
    %77 = vector.shape_cast %74 : vector<4x128xf32> to vector<1x1x4x128xf32>
    tpu.vector_store %arg4[%c0_63, %c2_64, %c0_65, %c0_66], %77 {strides = array<i32>} : memref<1x4x4x128xf32, #tpu.memory_space<vmem>>, vector<1x1x4x128xf32>,
    %c0_67 = arith.constant 0 : index
    %c3_68 = arith.constant 3 : index
    %c0_69 = arith.constant 0 : index
    %c0_70 = arith.constant 0 : index
    %78 = vector.load %arg3[%c0_67, %c3_68, %c0_69, %c0_70] : memref<1x4x4x128xf32, #tpu.memory_space<vmem>>, vector<1x1x4x128xf32>
    %79 = vector.shape_cast %78 : vector<1x1x4x128xf32> to vector<4x128xf32>
    %80 = arith.subf %79, %12 : vector<4x128xf32>
    %81 = math.exp %80 : vector<4x128xf32>
    %82 = arith.mulf %81, %32 : vector<4x128xf32>
    %c0_71 = arith.constant 0 : index
    %c3_72 = arith.constant 3 : index
    %c0_73 = arith.constant 0 : index
    %c0_74 = arith.constant 0 : index
    %83 = vector.load %arg5[%c0_71, %c3_72, %c0_73, %c0_74] : memref<1x4x4x128xf32, #tpu.memory_space<vmem>>, vector<1x1x4x128xf32>
    %84 = vector.shape_cast %83 : vector<1x1x4x128xf32> to vector<4x128xf32>
    %85 = vector.shape_cast %82 : vector<4x128xf32> to vector<1x1x4x128xf32>
    tpu.vector_store %arg5[%c0_71, %c3_72, %c0_73, %c0_74], %85 {strides = array<i32>} : memref<1x4x4x128xf32, #tpu.memory_space<vmem>>, vector<1x1x4x128xf32>,
    %c3_i32 = arith.constant 3 : i32
    %86 = vector.broadcast %c3_i32 : i32 to vector<4x128xi32>
    %87 = arith.cmpi eq, %1, %86 : vector<4x128xi32>
    %88 = arith.extui %87 : vector<4x128xi1> to vector<4x128xi32>
    %89 = arith.sitofp %88 : vector<4x128xi32> to vector<4x128xf32>
    %c0_75 = arith.constant 0 : index
    %c3_76 = arith.constant 3 : index
    %c0_77 = arith.constant 0 : index
    %c0_78 = arith.constant 0 : index
    %90 = vector.load %arg4[%c0_75, %c3_76, %c0_77, %c0_78] : memref<1x4x4x128xf32, #tpu.memory_space<vmem>>, vector<1x1x4x128xf32>
    %91 = vector.shape_cast %90 : vector<1x1x4x128xf32> to vector<4x128xf32>
    %92 = vector.shape_cast %89 : vector<4x128xf32> to vector<1x1x4x128xf32>
    tpu.vector_store %arg4[%c0_75, %c3_76, %c0_77, %c0_78], %92 {strides = array<i32>} : memref<1x4x4x128xf32, #tpu.memory_space<vmem>>, vector<1x1x4x128xf32>,
    return
  }
  func.func @transform_0(%arg0: i32, %arg1: i32) -> (i32, i32, i32) {
    %c0_i32 = arith.constant 0 : i32
    %c0_i32_0 = arith.constant 0 : i32
    return %arg0, %arg1, %c0_i32 : i32, i32, i32
  }
  func.func @transform_1(%arg0: i32, %arg1: i32) -> (i32, i32, i32, i32) {
    %c0_i32 = arith.constant 0 : i32
    %c0_i32_0 = arith.constant 0 : i32
    %c0_i32_1 = arith.constant 0 : i32
    return %arg0, %c0_i32, %arg1, %c0_i32_0 : i32, i32, i32, i32
  }
  func.func @transform_2(%arg0: i32, %arg1: i32) -> (i32, i32, i32, i32) {
    %c0_i32 = arith.constant 0 : i32
    %c0_i32_0 = arith.constant 0 : i32
    %c0_i32_1 = arith.constant 0 : i32
    return %arg0, %c0_i32, %arg1, %c0_i32_0 : i32, i32, i32, i32
  }
  func.func @transform_3(%arg0: i32, %arg1: i32) -> (i32, i32, i32, i32) {
    %c0_i32 = arith.constant 0 : i32
    %c0_i32_0 = arith.constant 0 : i32
    %c0_i32_1 = arith.constant 0 : i32
    return %arg0, %c0_i32, %arg1, %c0_i32_0 : i32, i32, i32, i32
  }
}

</mosaic_0001>

<bundles_post_ra>
// kernel: segmentation_loss_preprocess.1
= control target key start
LH: loop header
LB: loop body
LE: loop exit
PB: predicated region body
PF: predicated region fallthrough
CT: control target
= control target key end

     0   :  { %s584_s12 = smov 0   ;;  %s586_s13 = smov 0   ;;  %s637_s0 = inlined_call_operand.vmem [shape: s32[2,4,128], index: 0, kind: input, shape index: {}]   ;;  %s638_s1 = inlined_call_operand.vmem [shape: f32[2,4,4,128], index: 1, kind: input, shape index: {}]   ;;  %s639_s2 = inlined_call_operand.vmem [shape: f32[2,4,4,128], index: 2, kind: output, shape index: {0}]   ;;  %s640_s3 = inlined_call_operand.vmem [shape: f32[2,4,4,128], index: 3, kind: output, shape index: {1}]  }
   0x1   :  { %s588_s14 = smov 0  }
   0x2 LB: > { %s26_s15 = sadd.s32 1, %s557_s13  ;;  %p469_p0 = scmp.ge.s32.totalorder %s561_s14, 1  ;;  %s561_s14 = sphi %s588_s14, %s14_s14   ;;  %s557_s13 = sphi %s586_s13, %s642_s13   ;;  %s553_s12 = sphi %s584_s12, %s641_s12  }
   0x3   : > { %p28_p1 = scmp.ge.s32.totalorder %s26_s15, 2  ;;  %p175_p2 = scmp.lt.s32.totalorder %s561_s14, 3 }
   0x5   : > { %s644_s15 = smov (%p28_p1, %s26_s15), 0  ;;  %p176_p3 = pnand %p469_p0, %p175_p2 }
   0x6   : > { %p220_p4 = scmp.lt.s32.totalorder (!%p176_p3), %s553_s12, 1  ;;  %v563_v7 = vmov (!%p176_p3), 0.0  }
   0x7   : > { %179 = sbr.rel (%p176_p3) target bundleno = 61 (0x3d), region = 28 }
   0xe   : > { %s646_s12 = smov (!%p220_p4, %s553_s12), 1 }
   0xf   : > { %s602_s16 = sshll.u32 %s646_s12, 4  ;;  %s470_s17 = sshll.u32 %s646_s12, 2 }
  0x10   : > { %s608_s20 = scalar_lea.vmem %s638_s1, %s602_s16  ;;  %s226_s23 = scalar_lea.vmem %s637_s0, %s470_s17 }
  0x11   : > { %v252_v0 = vld [vmem:[%s608_s20] sm:$0xf]  ;;  %v477_v1 = vld [vmem:[%s608_s20 + $0x4] sm:$0xf]  ;;  %v478_v2 = vld [vmem:[%s608_s20 + $0x8] sm:$0xf]  ;;  %s242_s26 = scalar_lea.vmem %s639_s2, %s602_s16  ;;  %s250_s29 = scalar_lea.vmem %s640_s3, %s602_s16 }
  0x12   : > { %v255_v3 = vmax.f32 %v252_v0, %v477_v1  ;;  %v251_v4 = vld [vmem:[%s226_s23] sm:$0xf]  ;;  %v479_v5 = vld [vmem:[%s608_s20 + $0xc] sm:$0xf]  ;;  %v481_v21 = vld [vmem:[%s608_s20 + $0x4] sm:$0xf] }
  0x13   : > { %vm280_vm0 = vcmp.eq.s32.totalorder %v251_v4, 0  ;;  %vm291_vm1 = vcmp.eq.s32.totalorder %v251_v4, 1  ;;  %vm303_vm2 = vcmp.eq.s32.totalorder %v251_v4, 2  ;;  %vm315_vm3 = vcmp.eq.s32.totalorder %v251_v4, 3  ;;  %v485_v22 = vld [vmem:[%s608_s20 + $0x8] sm:$0xf] }
  0x14   : > { %v258_v6 = vmax.f32 %v255_v3, %v478_v2  ;;  %v480_v8 = vsel %vm280_vm0, 1.0, %v563_v7  ;;  %v483_v9 = vsel %vm291_vm1, 1.0, %v563_v7  ;;  %v487_v10 = vsel %vm303_vm2, 1.0, %v563_v7  ;;  %v489_v23 = vld [vmem:[%s608_s20 + $0xc] sm:$0xf] }
  0x15   : > { %283 = vst [vmem:[%s242_s26] sm:$0xf] %v480_v8  ;;  %484 = vst [vmem:[%s242_s26 + $0x4] sm:$0xf] %v483_v9  ;;  %v491_v11 = vsel %vm315_vm3, 1.0, %v563_v7 }
  0x16   : > { %488 = vst [vmem:[%s242_s26 + $0x8] sm:$0xf] %v487_v10  ;;  %v261_v12 = vmax.f32 %v258_v6, %v479_v5  ;;  %492 = vst [vmem:[%s242_s26 + $0xc] sm:$0xf] %v491_v11 }
  0x18   : > { %v262_v13 = vsub.f32 %v252_v0, %v261_v12  ;;  %v265_v14 = vsub.f32 %v477_v1, %v261_v12  ;;  %v269_v15 = vsub.f32 %v478_v2, %v261_v12  ;;  %v273_v16 = vsub.f32 %v479_v5, %v261_v12 }
  0x19   : > { %v285_v24 = vsub.f32 %v481_v21, %v261_v12  ;;  %v297_v25 = vsub.f32 %v485_v22, %v261_v12  ;;  %v309_v26 = vsub.f32 %v489_v23, %v261_v12 }
  0x1a   : > { %v263_v17 = vmul.f32 1.442695, %v262_v13  ;;  %v266_v18 = vmul.f32 1.442695, %v265_v14  ;;  %v270_v19 = vmul.f32 1.442695, %v269_v15 }
  0x1b   : > { %v274_v20 = vmul.f32 1.442695, %v273_v16  ;;  %v286_v28 = vmul.f32 1.442695, %v285_v24  ;;  %v298_v30 = vmul.f32 1.442695, %v297_v25 }
  0x1c   : > { %523 = vpow2.f32 %v263_v17  ;;  %v310_v33 = vmul.f32 1.442695, %v309_v26 }
  0x1d   : > { %525 = vpow2.f32 %v266_v18 }
  0x1e   : > { %527 = vpow2.f32 %v270_v19 }
  0x1f   : > { %529 = vpow2.f32 %v274_v20 }
  0x20   : > { %531 = vpow2.f32 %v286_v28 }
  0x21   : > { %533 = vpow2.f32 %v298_v30 }
  0x22   : > { %535 = vpow2.f32 %v310_v33 }
  0x26   : > { %v524_v27 = vpop.eup %523 }
  0x27   : > { %v526_v29 = vpop.eup %525 }
  0x28   : > { %v528_v31 = vpop.eup %527  ;;  %v268_v32 = vadd.f32 %v526_v29, %v524_v27 }
  0x29   : > { %v530_v34 = vpop.eup %529 }
  0x2a   : > { %v272_v35 = vadd.f32 %v528_v31, %v268_v32  ;;  %v532_v37 = vpop.eup %531 }
  0x2b   : > { %v534_v38 = vpop.eup %533 }
  0x2c   : > { %v276_v36 = vadd.f32 %v530_v34, %v272_v35  ;;  %v536_v39 = vpop.eup %535 }
  0x2e   : > { %537 = vrcp.f32 %v276_v36 }
  0x38   : > { %v538_v40 = vpop.eup %537 }
  0x39   : > { %v278_v41 = vmul.f32 %v538_v40, %v524_v27  ;;  %v288_v42 = vmul.f32 %v538_v40, %v532_v37  ;;  %v300_v43 = vmul.f32 %v538_v40, %v534_v38  ;;  %v312_v44 = vmul.f32 %v538_v40, %v536_v39 }
  0x3b   : > { %279 = vst [vmem:[%s250_s29] sm:$0xf] %v278_v41  ;;  %482 = vst [vmem:[%s250_s29 + $0x4] sm:$0xf] %v288_v42 }
  0x3c   : > { %486 = vst [vmem:[%s250_s29 + $0x8] sm:$0xf] %v300_v43  ;;  %490 = vst [vmem:[%s250_s29 + $0xc] sm:$0xf] %v312_v44 }
  0x3d PF: > { %s14_s14 = sadd.s32 1, %s561_s14   ;;  %s641_s12 = smov %s557_s13 }
  0x3e   : > { %p11_p5 = scmp.ge.s32.totalorder %s14_s14, 4   ;;  %s642_s13 = smov %s644_s15 }
  0x40   :  { %13 = sbr.rel (!%p11_p5) target bundleno = 2 (0x2), region = 82 }

</bundles_post_ra>
